<compile_context>
chip_gen: v7x
topology: tpu7x:2x2x1
jax: 0.10.0
libtpu: 0.0.40
codegen_flags: <defaults>
</compile_context>

<pallas_src>
import functools

import jax
import jax.numpy as jnp
from jax.experimental import pallas as pl
from jax.experimental.pallas import tpu as pltpu

# Module hyper-parameters (consistent with the module's __init__).
NUM_RX_ANTENAS = 4
DENSE_SAMPLING_L = 8
NUM_OF_ADC_P = 2

IN_FEATURES = NUM_RX_ANTENAS * DENSE_SAMPLING_L    # 32
OUT_FEATURES = NUM_OF_ADC_P * DENSE_SAMPLING_L     # 16

PACK = 8                                           # batch rows folded per packed row
PACKED_IN = PACK * IN_FEATURES                     # 256 (lane-dense input)
PACKED_OUT = PACK * OUT_FEATURES                   # 128 (full-lane output)

# Below this many batch rows a pallas_call is pure overhead; let XLA fuse.
MIN_PALLAS_ROWS = 512
# 8192 packed rows = 65536 batch rows per step: x tile 8 MiB + out tile 4 MiB,
# ~24.3 MiB with default double-buffering incl. the resident weight.
DEFAULT_TILE_ROWS = 8192
# Explicit scoped-VMEM limit: above v5e's 16 MiB default, below v7x's 64 MiB
# physical VMEM, with headroom over the ~24.3 MiB actually used.
VMEM_LIMIT_BYTES = 40 << 20


def pack_weight(weight, dtype=jnp.float32):
    """PyTorch-layout weight (OUT, IN) -> block-diagonal W^T (PACK*IN, PACK*OUT).

    Prepare this ONCE outside the jitted hot path and pass it as
    `weight_packed`.  (For bf16 I/O, pass dtype=jnp.bfloat16 and feed bf16
    activations from the producer; do not insert a cast in the wrapper — a
    separate cast re-reads/rewrites x in HBM and cancels the win.)
    """
    wt = weight.astype(dtype).T                          # (IN, OUT)
    return jnp.kron(jnp.eye(PACK, dtype=wt.dtype), wt)   # (PACK*IN, PACK*OUT)


def _analog_filter_kernel(x_ref, w_ref, o_ref):
    # One MXU matmul per (tm, 256) x-tile against the resident (256, 128)
    # block-diagonal weight; full 128-lane output stores.
    o_ref[...] = jnp.dot(
        x_ref[...], w_ref[...], preferred_element_type=jnp.float32
    ).astype(o_ref.dtype)


def _xla_forward(x, weight):
    return jnp.dot(x, weight.T, preferred_element_type=jnp.float32).astype(x.dtype)


def analog_network_forward(x, weight, weight_packed=None, *,
                           tile_rows=DEFAULT_TILE_ROWS,
                           min_pallas_rows=MIN_PALLAS_ROWS):
    """Forward pass of AnalogNetwork.

    x:      (B, IN_FEATURES) float32 (or bfloat16 from the producer)
    weight: (OUT_FEATURES, IN_FEATURES) float32 (PyTorch Linear layout)
    weight_packed: optional precomputed pack_weight(weight) (recommended)
    """
    B, K = x.shape
    N = weight.shape[0]

    # Tiny batch: Pallas launch / grid-step overhead dwarfs compute.
    if B < min_pallas_rows:
        return _xla_forward(x, weight)

    if weight_packed is None:
        # Tiny (256x128) kron; still prefer precomputing it outside jit when
        # weight is a traced argument.
        weight_packed = pack_weight(weight)

    # Split off the <PACK-row tail instead of padding/slicing the full array.
    tail = B % PACK
    b_main = B - tail
    if b_main == 0:
        return _xla_forward(x, weight)

    x_main = x if tail == 0 else x[:b_main]
    bp = b_main // PACK
    xp = x_main.reshape(bp, PACK * K)            # free row-major reshape

    # Packed-row tile: multiple of 8 (sublane), capped by the batch. The last
    # grid block may be partial — Pallas drops out-of-bounds output stores.
    tm = min(tile_rows, bp)
    tm = max(8, (tm // 8) * 8)
    grid_m = pl.cdiv(bp, tm)

    cost = pl.CostEstimate(
        flops=2 * b_main * K * N,
        transcendentals=0,
        bytes_accessed=(b_main * (K + N) * x.dtype.itemsize
                        + weight_packed.size * weight_packed.dtype.itemsize),
    )

    yp = pl.pallas_call(
        _analog_filter_kernel,
        out_shape=jax.ShapeDtypeStruct((bp, PACK * N), x.dtype),
        grid_spec=pltpu.PrefetchScalarGridSpec(
            num_scalar_prefetch=0,
            grid=(grid_m,),
            in_specs=[
                # x: tiled along the packed-batch axis.
                pl.BlockSpec((tm, PACK * K), lambda i: (i, 0)),
                # Packed weight: constant index map -> DMA'd once, resident.
                pl.BlockSpec((PACK * K, PACK * N), lambda i: (0, 0)),
            ],
            out_specs=pl.BlockSpec((tm, PACK * N), lambda i: (i, 0)),
        ),
        compiler_params=pltpu.CompilerParams(
            # Rows are independent: "parallel" lets v7x shard the batch axis
            # across both TensorCores; neutral on single-TC v5e/v6e.
            dimension_semantics=("parallel",),
            vmem_limit_bytes=VMEM_LIMIT_BYTES,
        ),
        cost_estimate=cost,
    )(xp, weight_packed)

    y = yp.reshape(b_main, N)                    # free row-major reshape
    if tail:
        y = jnp.concatenate([y, _xla_forward(x[b_main:], weight)], axis=0)
    return y


if __name__ == "__main__":
    key = jax.random.PRNGKey(0)
    kx, kw = jax.random.split(key)

    # Misaligned batch (1002 % 8 != 0) exercises the Pallas prefix, a partial
    # last grid block and the tiny XLA tail.
    batch = 1002
    x = jax.random.normal(kx, (batch, IN_FEATURES), dtype=jnp.float32)

    # Deterministic PyTorch-Linear-style init: U(-1/sqrt(in), 1/sqrt(in)).
    bound = 1.0 / jnp.sqrt(jnp.float32(IN_FEATURES))
    weight = jax.random.uniform(
        kw, (OUT_FEATURES, IN_FEATURES), dtype=jnp.float32,
        minval=-bound, maxval=bound,
    )

    # Packed (block-diagonal) weight prepared once, outside the hot path.
    w_packed = jax.block_until_ready(pack_weight(weight))

    # tile_rows=32 keeps the demo small while producing a 4-step grid with a
    # ragged last block (125 packed rows).
    fwd = jax.jit(functools.partial(analog_network_forward, tile_rows=32))
    y = jax.block_until_ready(fwd(x, weight, w_packed))

    y_ref = x @ weight.T
    assert y.shape == (batch, OUT_FEATURES)
    assert jnp.allclose(y, y_ref, atol=1e-5, rtol=1e-5)

    # Aligned batch: zero-copy path (no slice/pad/concat), single grid step.
    xa = x[:1024]
    ya = jax.block_until_ready(jax.jit(analog_network_forward)(xa, weight, w_packed))
    assert jnp.allclose(ya, xa @ weight.T, atol=1e-5, rtol=1e-5)

    # Tiny-batch path (plain XLA fallback) — sanity check only.
    y_small = analog_network_forward(x[:2], weight, w_packed)
    assert jnp.allclose(y_small, x[:2] @ weight.T, atol=1e-5, rtol=1e-5)

    print("KERNEL_OK")
</pallas_src>

<mosaic_0001>
module attributes {stable_mosaic.version = 11 : i64} {
  func.func @_analog_filter_kernel(%arg0: i32, %arg1: memref<32x256xf32, #tpu.memory_space<vmem>>, %arg2: memref<256x128xf32, #tpu.memory_space<vmem>>, %arg3: memref<32x128xf32, #tpu.memory_space<vmem>>) attributes {dimension_semantics = [#tpu.dimension_semantics<parallel>], iteration_bounds = array<i64: 4>, scalar_prefetch = 0 : i64, scratch_operands = 0 : i64, tpu.core_type = #tpu.core_type<tc>, window_params = [{transform_indices = @transform_0, window_bounds = array<i64: 32, 256>}, {pipeline_mode = #tpu.pipeline_mode<synchronous>, transform_indices = @transform_1, window_bounds = array<i64: 256, 128>}, {transform_indices = @transform_2, window_bounds = array<i64: 32, 128>}]} {
    %c0 = arith.constant 0 : index
    %c0_0 = arith.constant 0 : index
    %0 = vector.load %arg1[%c0, %c0_0] : memref<32x256xf32, #tpu.memory_space<vmem>>, vector<32x256xf32>
    %c0_1 = arith.constant 0 : index
    %c0_2 = arith.constant 0 : index
    %1 = vector.load %arg2[%c0_1, %c0_2] : memref<256x128xf32, #tpu.memory_space<vmem>>, vector<256x128xf32>
    %cst = arith.constant dense<0.000000e+00> : vector<32x128xf32>
    %2 = tpu.matmul %0, %1, %cst {dimension_numbers = #tpu.dot_dimension_numbers<[1], [0], [0], [1], [0, 0, 1, 1], [], []>} : vector<32x256xf32>, vector<256x128xf32>, vector<32x128xf32> -> vector<32x128xf32>
    %c0_3 = arith.constant 0 : index
    %c0_4 = arith.constant 0 : index
    %3 = vector.load %arg3[%c0_3, %c0_4] : memref<32x128xf32, #tpu.memory_space<vmem>>, vector<32x128xf32>
    tpu.vector_store %arg3[%c0_3, %c0_4], %2 {strides = array<i32>} : memref<32x128xf32, #tpu.memory_space<vmem>>, vector<32x128xf32>,
    return
  }
  func.func @transform_0(%arg0: i32) -> (i32, i32) {
    %c0_i32 = arith.constant 0 : i32
    %c0_i32_0 = arith.constant 0 : i32
    return %arg0, %c0_i32 : i32, i32
  }
  func.func @transform_1(%arg0: i32) -> (i32, i32) {
    %c0_i32 = arith.constant 0 : i32
    %c0_i32_0 = arith.constant 0 : i32
    %c0_i32_1 = arith.constant 0 : i32
    return %c0_i32, %c0_i32_0 : i32, i32
  }
  func.func @transform_2(%arg0: i32) -> (i32, i32) {
    %c0_i32 = arith.constant 0 : i32
    %c0_i32_0 = arith.constant 0 : i32
    return %arg0, %c0_i32 : i32, i32
  }
}

</mosaic_0001>

<bundles_post_ra>
// kernel: analog_network_forward.1
= control target key start
LH: loop header
LB: loop body
LE: loop exit
PB: predicated region body
PF: predicated region fallthrough
CT: control target
= control target key end

     0   :  { %s471_s9 = smov 0   ;;  %s598_s0 = inlined_call_operand.vmem [shape: f32[125,256], index: 0, kind: input, shape index: {}]   ;;  %s599_s1 = inlined_call_operand.vmem [shape: f32[256,128], index: 1, kind: input, shape index: {}]   ;;  %s600_s2 = inlined_call_operand.vmem [shape: f32[125,128], index: 2, kind: output, shape index: {}]  }
   0x1 LB: > { %s335_s10 = sadd.s32 4294967295, %s454_s9   ;;  %p339_p0 = scmp.ge.s32.totalorder %s454_s9, 1  ;;  %s454_s9 = sphi %s471_s9, %s12_s9  }
   0x2   : > { %p114_p1 = scmp.lt.s32.totalorder %s454_s9, 5 }
   0x4   : > { %p115_p2 = pnand %p339_p0, %p114_p1 }
   0x5   : > { %v174_v0 = vld [vmem:[%s599_s1 + $0x80] sm:$0xff] (!%p115_p2)  ;;  %v175_v1 = vld [vmem:[%s599_s1 + $0x88] sm:$0xff] (!%p115_p2)  ;;  %s340_s17 = sshll.u32 (!%p115_p2), %s335_s10, 2  ;;  %v176_v5 = vld [vmem:[%s599_s1 + $0x90] sm:$0xff] (!%p115_p2) }
   0x6   : > { %118 = sbr.rel (%p115_p2) target bundleno = 261 (0x105), region = 28  ;;  %v158_v2 = vld [vmem:[%s599_s1] sm:$0xff] (!%p115_p2)  ;;  %v392_v3 = vpack.c.bf16 (!%p115_p2), %v175_v1, %v174_v0  ;;  %v159_v4 = vld [vmem:[%s599_s1 + $0x8] sm:$0xff] (!%p115_p2)  ;;  %v177_v6 = vld [vmem:[%s599_s1 + $0x98] sm:$0xff] (!%p115_p2)  ;;  %p138_p3 = scmp.lt.s32.totalorder (!%p115_p2), %s340_s17, 15 }
   0x7   : > { %v394_v7 = vpack.c.bf16 (!%p115_p2), %v159_v4, %v158_v2  ;;  %v396_v8 = vpack.c.bf16 (!%p115_p2), %v177_v6, %v176_v5  ;;  %v160_v9 = vld [vmem:[%s599_s1 + $0x10] sm:$0xff] (!%p115_p2)  ;;  %v161_v10 = vld [vmem:[%s599_s1 + $0x18] sm:$0xff] (!%p115_p2)  ;;  %v178_v11 = vld [vmem:[%s599_s1 + $0xa0] sm:$0xff] (!%p115_p2) }
   0x8   : > { %393 = vmatprep.subr.bf16.mxu0 (!%p115_p2), %v392_v3  ;;  %424 = vmatprep.subr.bf16.mxu1 (!%p115_p2), %v392_v3  ;;  %v179_v12 = vld [vmem:[%s599_s1 + $0xa8] sm:$0xff] (!%p115_p2)  ;;  %v398_v13 = vpack.c.bf16 (!%p115_p2), %v161_v10, %v160_v9  ;;  %v162_v15 = vld [vmem:[%s599_s1 + $0x20] sm:$0xff] (!%p115_p2)  ;;  %v180_v17 = vld [vmem:[%s599_s1 + $0xb0] sm:$0xff] (!%p115_p2) }
   0x9   : > { %395 = vmatpush3.bf16.msra.mxu0 (!%p115_p2), %v394_v7  ;;  %432 = vmatpush3.bf16.msra.mxu1 (!%p115_p2), %v394_v7  ;;  %v400_v14 = vpack.c.bf16 (!%p115_p2), %v179_v12, %v178_v11  ;;  %v163_v16 = vld [vmem:[%s599_s1 + $0x28] sm:$0xff] (!%p115_p2)  ;;  %v181_v18 = vld [vmem:[%s599_s1 + $0xb8] sm:$0xff] (!%p115_p2)  ;;  %v164_v21 = vld [vmem:[%s599_s1 + $0x30] sm:$0xff] (!%p115_p2) }
   0xa   : > { %397 = vmatprep.subr.bf16.mxu0 (!%p115_p2), %v396_v8  ;;  %425 = vmatprep.subr.bf16.mxu1 (!%p115_p2), %v396_v8  ;;  %v402_v19 = vpack.c.bf16 (!%p115_p2), %v163_v16, %v162_v15  ;;  %v404_v20 = vpack.c.bf16 (!%p115_p2), %v181_v18, %v180_v17  ;;  %v165_v22 = vld [vmem:[%s599_s1 + $0x38] sm:$0xff] (!%p115_p2)  ;;  %v182_v23 = vld [vmem:[%s599_s1 + $0xc0] sm:$0xff] (!%p115_p2)  ;;  %v183_v24 = vld [vmem:[%s599_s1 + $0xc8] sm:$0xff] (!%p115_p2) }
   0xb   : > { %v406_v27 = vpack.c.bf16 (!%p115_p2), %v165_v22, %v164_v21  ;;  %v408_v28 = vpack.c.bf16 (!%p115_p2), %v183_v24, %v182_v23  ;;  %v166_v29 = vld [vmem:[%s599_s1 + $0x40] sm:$0xff] (!%p115_p2)  ;;  %v167_v30 = vld [vmem:[%s599_s1 + $0x48] sm:$0xff] (!%p115_p2)  ;;  %v184_v31 = vld [vmem:[%s599_s1 + $0xd0] sm:$0xff] (!%p115_p2) }
   0xc   : > { %v185_v32 = vld [vmem:[%s599_s1 + $0xd8] sm:$0xff] (!%p115_p2)  ;;  %v410_v33 = vpack.c.bf16 (!%p115_p2), %v167_v30, %v166_v29  ;;  %v168_v35 = vld [vmem:[%s599_s1 + $0x50] sm:$0xff] (!%p115_p2)  ;;  %v186_v37 = vld [vmem:[%s599_s1 + $0xe0] sm:$0xff] (!%p115_p2) }
   0xd   : > { %s602_s17 = smov (!%p138_p3, %s340_s17), 15  ;;  %399 = vmatpush3.bf16.msra.mxu0 %v398_v13  ;;  %433 = vmatpush3.bf16.msra.mxu1 %v398_v13  ;;  %v412_v34 = vpack.c.bf16 %v185_v32, %v184_v31  ;;  %v169_v36 = vld [vmem:[%s599_s1 + $0x58] sm:$0xff]  ;;  %v187_v38 = vld [vmem:[%s599_s1 + $0xe8] sm:$0xff]  ;;  %v170_v41 = vld [vmem:[%s599_s1 + $0x60] sm:$0xff] }
   0xe   : > { %s347_s8 = sshll.u32 %s602_s17, 4  ;;  %401 = vmatprep.subr.bf16.mxu0 %v400_v14  ;;  %426 = vmatprep.subr.bf16.mxu1 %v400_v14  ;;  %v414_v39 = vpack.c.bf16 %v169_v36, %v168_v35  ;;  %v416_v40 = vpack.c.bf16 %v187_v38, %v186_v37  ;;  %v171_v42 = vld [vmem:[%s599_s1 + $0x68] sm:$0xff]  ;;  %v188_v43 = vld [vmem:[%s599_s1 + $0xf0] sm:$0xff]  ;;  %v189_v44 = vld [vmem:[%s599_s1 + $0xf8] sm:$0xff]  ;;  %s344_s29 = sshll.u32 %s602_s17, 3 }
   0xf   : > { %s527_s16 = scalar_lea.vmem %s598_s0, %s347_s8  ;;  %v418_v45 = vpack.c.bf16 %v171_v42, %v170_v41  ;;  %v420_v46 = vpack.c.bf16 %v189_v44, %v188_v43  ;;  %v172_v47 = vld [vmem:[%s599_s1 + $0x70] sm:$0xff]  ;;  %v173_v48 = vld [vmem:[%s599_s1 + $0x78] sm:$0xff]  ;;  %s148_s4 = scalar_lea.vmem %s600_s2, %s344_s29 }
  0x10   : > { %v151_v25 = vld [vmem:[%s527_s16 + $0x8] sm:$0xff]  ;;  %v422_v49 = vpack.c.bf16 %v173_v48, %v172_v47  ;;  %v150_v50 = vld [vmem:[%s527_s16] sm:$0xff]  ;;  %v153_v52 = vld [vmem:[%s527_s16 + $0x18] sm:$0xff] }
  0x11   : > { %254 = vmatprep.mubr.f32.mxu0 %v151_v25  ;;  %v155_v26 = vld [vmem:[%s527_s16 + $0x28] sm:$0xff]  ;;  %403 = vmatpush3.bf16.msra.mxu0 %v402_v19  ;;  %v154_v51 = vld [vmem:[%s527_s16 + $0x20] sm:$0xff]  ;;  %v157_v53 = vld [vmem:[%s527_s16 + $0x38] sm:$0xff] }
  0x12   : > { %434 = vmatpush3.bf16.msra.mxu1 %v402_v19  ;;  %405 = vmatprep.subr.bf16.mxu0 %v404_v20  ;;  %v152_v54 = vld [vmem:[%s527_s16 + $0x10] sm:$0xff] }
  0x13   : > { %427 = vmatprep.subr.bf16.mxu1 %v404_v20  ;;  %264 = vmatprep.mubr.f32.mxu1 %v155_v26  ;;  %v156_v55 = vld [vmem:[%s527_s16 + $0x30] sm:$0xff] }
  0x15   : > { %407 = vmatpush3.bf16.msra.mxu0 %v406_v27 }
  0x16   : > { %435 = vmatpush3.bf16.msra.mxu1 %v406_v27  ;;  %409 = vmatprep.subr.bf16.mxu0 %v408_v28 }
  0x17   : > { %428 = vmatprep.subr.bf16.mxu1 %v408_v28 }
  0x19   : > { %411 = vmatpush3.bf16.msra.mxu0 %v410_v33 }
  0x1a   : > { %436 = vmatpush3.bf16.msra.mxu1 %v410_v33  ;;  %413 = vmatprep.subr.bf16.mxu0 %v412_v34 }
  0x1b   : > { %429 = vmatprep.subr.bf16.mxu1 %v412_v34 }
  0x1d   : > { %415 = vmatpush3.bf16.msra.mxu0 %v414_v39 }
  0x1e   : > { %437 = vmatpush3.bf16.msra.mxu1 %v414_v39  ;;  %417 = vmatprep.subr.bf16.mxu0 %v416_v40 }
  0x1f   : > { %430 = vmatprep.subr.bf16.mxu1 %v416_v40 }
  0x21   : > { %419 = vmatpush3.bf16.msra.mxu0 %v418_v45 }
  0x22   : > { %438 = vmatpush3.bf16.msra.mxu1 %v418_v45  ;;  %421 = vmatprep.subr.bf16.mxu0 %v420_v46 }
  0x23   : > { %431 = vmatprep.subr.bf16.mxu1 %v420_v46 }
  0x25   : > { %423 = vmatpush3.bf16.msra.mxu0 %v422_v49 }
  0x26   : > { %439 = vmatpush3.bf16.msra.mxu1 %v422_v49 }
  0x28   : > { %255 = vmatmul.mubr.f32.vlgmr.msra.gmra.mrb[0].mxu0 %v150_v50 }
  0x29   : > { %265 = vmatmul.mubr.f32.vlgmr.msra.gmra.mrb[0].mxu1 %v154_v51  ;;  %259 = vmatprep.mubr.f32.mxu0 %v153_v52 }
  0x2a   : > { %269 = vmatprep.mubr.f32.mxu1 %v157_v53 }
  0x2c   : > { %260 = vmatmul.mubr.f32.gmra.mrb[2].mxu0 %v152_v54 }
  0x2d   : > { %270 = vmatmul.mubr.f32.gmra.mrb[2].mxu1 %v156_v55 }
  0xfb   : > { %v380_v56 = vpop.f32.mrb[0].mxu0 }
  0xfc   : > { %v386_v57 = vpop.f32.mrb[0].mxu1  ;;  %v381_v58 = vpop.f32.mrb[1].mxu0 }
  0xfd   : > { %v387_v59 = vpop.f32.mrb[1].mxu1  ;;  %v382_v60 = vadd.f32 %v381_v58, %v380_v56 }
  0xfe   : > { %v388_v61 = vadd.f32 %v387_v59, %v386_v57 }
  0xff   : > { %275 = vst [vmem:[%s148_s4] sm:$0xff] %v382_v60  ;;  %v383_v62 = vpop.f32.mrb[2].mxu0 }
 0x100   : > { %277 = vst [vmem:[%s148_s4 + $0x10] sm:$0xff] %v388_v61  ;;  %v389_v63 = vpop.f32.mrb[2].mxu1  ;;  %v384_v0 = vpop.f32.mrb[3].mxu0 }
 0x101   : > { %v390_v1 = vpop.f32.mrb[3].mxu1  ;;  %v385_v2 = vadd.f32 %v384_v0, %v383_v62 }
 0x102   : > { %v391_v3 = vadd.f32 %v390_v1, %v389_v63 }
 0x103   : > { %276 = vst [vmem:[%s148_s4 + $0x8] sm:$0xff] %v385_v2 }
 0x104   : > { %278 = vst [vmem:[%s148_s4 + $0x18] sm:$0xff] %v391_v3 }
 0x105 PF: > { %s12_s9 = sadd.s32 1, %s454_s9  }
 0x106   : > { %p9_p4 = scmp.ge.s32.totalorder %s12_s9, 6  }
 0x108   :  { %11 = sbr.rel (!%p9_p4) target bundleno = 1 (0x1), region = 58 }

</bundles_post_ra>
